<compile_context>
chip_gen: v7x
topology: tpu7x:2x2x1
jax: 0.10.0
libtpu: 0.0.40
codegen_flags: <defaults>
</compile_context>

<pallas_src>
import jax
import jax.numpy as jnp
from jax.experimental import pallas as pl
from jax.experimental.pallas import tpu as pltpu

IN_FEATURES = 28 * 28      # 784 (full last dim of x -> legal block width)
HIDDEN = 128
OUT_FEATURES = 10
OUT_PADDED = 16            # lane-padded logits; wrapper slices [:, :10]
NEG_SLOPE = 0.01           # PyTorch LeakyReLU default
TB_MAX = 2048              # max batch tile (f32 x tile: 2 x 6.1 MiB buffers)
VMEM_LIMIT = 32 * 1024 * 1024


def _cdiv(a, b):
    return -(-a // b)


def _round_up(n, m):
    return ((n + m - 1) // m) * m


def classifier_kernel(x_ref, w1_ref, b1_ref, w2_ref, b2_ref, out_ref):
    # x_ref:  (TB, 784) f32      w1_ref: (784, 128) bf16   b1_ref: (1, 128) f32
    # w2_ref: (128, 16) bf16     b2_ref: (1, 16)    f32    out_ref: (TB, 16) f32
    x = x_ref[...].astype(jnp.bfloat16)

    # Layer 1 on the MXU (bf16 inputs, f32 accumulate) + bias.
    h = jnp.dot(x, w1_ref[...], preferred_element_type=jnp.float32) + b1_ref[...]

    # LeakyReLU on the VPU.
    h = jnp.maximum(h, NEG_SLOPE * h)

    # Layer 2 on the MXU + bias (16-lane output).
    out = jnp.dot(h.astype(jnp.bfloat16), w2_ref[...],
                  preferred_element_type=jnp.float32) + b2_ref[...]

    out_ref[...] = out.astype(out_ref.dtype)


def prepare_params(w1, b1, w2, b2):
    """One-time parameter prep (cast to bf16, pad logits dim to 16 lanes).

    w1: (784, 128), b1: (1, 128), w2: (128, 10), b2: (1, 10), all f32,
    stored pre-transposed as (in_features, out_features).
    """
    w1_p = w1.astype(jnp.bfloat16)                                   # (784, 128)
    b1_p = b1.reshape(1, HIDDEN).astype(jnp.float32)                 # (1, 128)
    w2_p = jnp.pad(w2, ((0, 0), (0, OUT_PADDED - OUT_FEATURES))
                   ).astype(jnp.bfloat16)                            # (128, 16)
    b2_p = jnp.pad(b2.reshape(1, OUT_FEATURES),
                   ((0, 0), (0, OUT_PADDED - OUT_FEATURES))
                   ).astype(jnp.float32)                             # (1, 16)
    return w1_p, b1_p, w2_p, b2_p


def _choose_tiling(batch, tb_max):
    tb_max = max(16, _round_up(tb_max, 16))
    nt = _cdiv(max(batch, 1), tb_max)
    # Give v7x's second TensorCore something to do when everything would fit
    # in a single tile but the batch is not tiny.
    if nt == 1 and batch >= 512:
        nt = 2
    tb = _round_up(_cdiv(max(batch, 1), nt), 16)   # multiple of 16 (bf16-safe)
    return tb, nt * tb


def classifier_forward(x, params, *, tb_max=TB_MAX):
    """Forward pass.  x: (B, 784) f32; params = prepare_params(...).  -> (B, 10) f32."""
    w1_p, b1_p, w2_p, b2_p = params
    B = x.shape[0]
    tb, b_pad = _choose_tiling(B, tb_max)

    # Only batch-row padding (no feature pad, no dtype cast) of x.
    x_p = x if b_pad == B else jnp.pad(x, ((0, b_pad - B), (0, 0)))

    grid = (b_pad // tb,)
    flops = 2 * b_pad * (IN_FEATURES * HIDDEN + HIDDEN * OUT_PADDED)
    bytes_accessed = (
        x_p.size * 4
        + w1_p.size * 2 + w2_p.size * 2
        + b1_p.size * 4 + b2_p.size * 4
        + b_pad * OUT_PADDED * 4
    )

    out = pl.pallas_call(
        classifier_kernel,
        out_shape=jax.ShapeDtypeStruct((b_pad, OUT_PADDED), jnp.float32),
        grid_spec=pltpu.PrefetchScalarGridSpec(
            num_scalar_prefetch=0,
            grid=grid,
            in_specs=[
                pl.BlockSpec((tb, IN_FEATURES), lambda i: (i, 0)),      # x: streamed f32
                pl.BlockSpec((IN_FEATURES, HIDDEN), lambda i: (0, 0)),  # W1: resident
                pl.BlockSpec((1, HIDDEN), lambda i: (0, 0)),            # b1: resident
                pl.BlockSpec((HIDDEN, OUT_PADDED), lambda i: (0, 0)),   # W2: resident
                pl.BlockSpec((1, OUT_PADDED), lambda i: (0, 0)),        # b2: resident
            ],
            out_specs=pl.BlockSpec((tb, OUT_PADDED), lambda i: (i, 0)),
        ),
        compiler_params=pltpu.CompilerParams(
            dimension_semantics=("parallel",),
            vmem_limit_bytes=VMEM_LIMIT,
        ),
        cost_estimate=pl.CostEstimate(
            flops=flops, transcendentals=0, bytes_accessed=bytes_accessed
        ),
    )(x_p, w1_p, b1_p, w2_p, b2_p)

    # Drop batch padding and the lane padding of the 10-way logits.
    return out[:B, :OUT_FEATURES]


def init_params(key):
    """Deterministic nn.Linear-style init: U(-1/sqrt(fan_in), 1/sqrt(fan_in))."""
    k1, k2, k3, k4 = jax.random.split(key, 4)
    bound1 = 1.0 / jnp.sqrt(float(IN_FEATURES))
    bound2 = 1.0 / jnp.sqrt(float(HIDDEN))
    # Stored pre-transposed: (in_features, out_features)
    w1 = jax.random.uniform(k1, (IN_FEATURES, HIDDEN), jnp.float32, -bound1, bound1)
    b1 = jax.random.uniform(k2, (1, HIDDEN), jnp.float32, -bound1, bound1)
    w2 = jax.random.uniform(k3, (HIDDEN, OUT_FEATURES), jnp.float32, -bound2, bound2)
    b2 = jax.random.uniform(k4, (1, OUT_FEATURES), jnp.float32, -bound2, bound2)
    return w1, b1, w2, b2


def reference_forward(x, w1, b1, w2, b2):
    """Same math as the kernel (bf16 matmul inputs, f32 accumulate) in plain JAX.

    Note: intentionally rounds through bf16 (differs from a pure-f32 PyTorch
    Classifier by < ~1e-2 on unit-scale inputs)."""
    xb = x.astype(jnp.bfloat16).astype(jnp.float32)
    w1b = w1.astype(jnp.bfloat16).astype(jnp.float32)
    w2b = w2.astype(jnp.bfloat16).astype(jnp.float32)
    h = xb @ w1b + b1
    h = jnp.where(h > 0, h, NEG_SLOPE * h)
    hb = h.astype(jnp.bfloat16).astype(jnp.float32)
    return hb @ w2b + b2


if __name__ == "__main__":
    key = jax.random.PRNGKey(0)
    kx, kp = jax.random.split(key)

    B = 8  # small batch; not a multiple of 16 -> exercises the padding path
    x = jax.random.normal(kx, (B, IN_FEATURES), jnp.float32)
    w1, b1, w2, b2 = init_params(kp)
    params = prepare_params(w1, b1, w2, b2)

    out = classifier_forward(x, params)
    out = jax.block_until_ready(out)

    ref = reference_forward(x, w1, b1, w2, b2)
    assert out.shape == (B, OUT_FEATURES)
    assert jnp.allclose(out, ref, atol=2e-2, rtol=2e-2)

    print("KERNEL_OK")
</pallas_src>

<mosaic_0001>
module attributes {stable_mosaic.version = 11 : i64} {
  func.func @classifier_kernel(%arg0: i32, %arg1: memref<16x784xf32, #tpu.memory_space<vmem>>, %arg2: memref<784x128xbf16, #tpu.memory_space<vmem>>, %arg3: memref<1x128xf32, #tpu.memory_space<vmem>>, %arg4: memref<128x16xbf16, #tpu.memory_space<vmem>>, %arg5: memref<1x16xf32, #tpu.memory_space<vmem>>, %arg6: memref<16x16xf32, #tpu.memory_space<vmem>>) attributes {dimension_semantics = [#tpu.dimension_semantics<parallel>], iteration_bounds = array<i64: 1>, scalar_prefetch = 0 : i64, scratch_operands = 0 : i64, tpu.core_type = #tpu.core_type<tc>, window_params = [{transform_indices = @transform_0, window_bounds = array<i64: 16, 784>}, {pipeline_mode = #tpu.pipeline_mode<synchronous>, transform_indices = @transform_1, window_bounds = array<i64: 784, 128>}, {pipeline_mode = #tpu.pipeline_mode<synchronous>, transform_indices = @transform_2, window_bounds = array<i64: 1, 128>}, {pipeline_mode = #tpu.pipeline_mode<synchronous>, transform_indices = @transform_3, window_bounds = array<i64: 128, 16>}, {pipeline_mode = #tpu.pipeline_mode<synchronous>, transform_indices = @transform_4, window_bounds = array<i64: 1, 16>}, {transform_indices = @transform_5, window_bounds = array<i64: 16, 16>}]} {
    %c0 = arith.constant 0 : index
    %c0_0 = arith.constant 0 : index
    %0 = vector.load %arg1[%c0, %c0_0] : memref<16x784xf32, #tpu.memory_space<vmem>>, vector<16x784xf32>
    %1 = arith.truncf %0 : vector<16x784xf32> to vector<16x784xbf16>
    %c0_1 = arith.constant 0 : index
    %c0_2 = arith.constant 0 : index
    %2 = vector.load %arg2[%c0_1, %c0_2] : memref<784x128xbf16, #tpu.memory_space<vmem>>, vector<784x128xbf16>
    %cst = arith.constant dense<0.000000e+00> : vector<16x128xf32>
    %3 = tpu.matmul %1, %2, %cst {dimension_numbers = #tpu.dot_dimension_numbers<[1], [0], [0], [1], [0, 0, 1, 1], [], []>} : vector<16x784xbf16>, vector<784x128xbf16>, vector<16x128xf32> -> vector<16x128xf32>
    %c0_3 = arith.constant 0 : index
    %c0_4 = arith.constant 0 : index
    %4 = vector.load %arg3[%c0_3, %c0_4] : memref<1x128xf32, #tpu.memory_space<vmem>>, vector<1x128xf32>
    %5 = vector.broadcast %4 : vector<1x128xf32> to vector<16x128xf32>
    %6 = arith.addf %3, %5 : vector<16x128xf32>
    %cst_5 = arith.constant 0.00999999977 : f32
    %7 = vector.broadcast %cst_5 : f32 to vector<16x128xf32>
    %8 = arith.mulf %7, %6 : vector<16x128xf32>
    %9 = arith.maximumf %6, %8 : vector<16x128xf32>
    %10 = arith.truncf %9 : vector<16x128xf32> to vector<16x128xbf16>
    %c0_6 = arith.constant 0 : index
    %c0_7 = arith.constant 0 : index
    %11 = vector.load %arg4[%c0_6, %c0_7] : memref<128x16xbf16, #tpu.memory_space<vmem>>, vector<128x16xbf16>
    %cst_8 = arith.constant dense<0.000000e+00> : vector<16x16xf32>
    %12 = tpu.matmul %10, %11, %cst_8 {dimension_numbers = #tpu.dot_dimension_numbers<[1], [0], [0], [1], [0, 0, 1, 1], [], []>} : vector<16x128xbf16>, vector<128x16xbf16>, vector<16x16xf32> -> vector<16x16xf32>
    %c0_9 = arith.constant 0 : index
    %c0_10 = arith.constant 0 : index
    %13 = vector.load %arg5[%c0_9, %c0_10] : memref<1x16xf32, #tpu.memory_space<vmem>>, vector<1x16xf32>
    %14 = vector.broadcast %13 : vector<1x16xf32> to vector<16x16xf32>
    %15 = arith.addf %12, %14 : vector<16x16xf32>
    %c0_11 = arith.constant 0 : index
    %c0_12 = arith.constant 0 : index
    %16 = vector.load %arg6[%c0_11, %c0_12] : memref<16x16xf32, #tpu.memory_space<vmem>>, vector<16x16xf32>
    tpu.vector_store %arg6[%c0_11, %c0_12], %15 {strides = array<i32>} : memref<16x16xf32, #tpu.memory_space<vmem>>, vector<16x16xf32>,
    return
  }
  func.func @transform_0(%arg0: i32) -> (i32, i32) {
    %c0_i32 = arith.constant 0 : i32
    %c0_i32_0 = arith.constant 0 : i32
    return %arg0, %c0_i32 : i32, i32
  }
  func.func @transform_1(%arg0: i32) -> (i32, i32) {
    %c0_i32 = arith.constant 0 : i32
    %c0_i32_0 = arith.constant 0 : i32
    %c0_i32_1 = arith.constant 0 : i32
    return %c0_i32, %c0_i32_0 : i32, i32
  }
  func.func @transform_2(%arg0: i32) -> (i32, i32) {
    %c0_i32 = arith.constant 0 : i32
    %c0_i32_0 = arith.constant 0 : i32
    %c0_i32_1 = arith.constant 0 : i32
    return %c0_i32, %c0_i32_0 : i32, i32
  }
  func.func @transform_3(%arg0: i32) -> (i32, i32) {
    %c0_i32 = arith.constant 0 : i32
    %c0_i32_0 = arith.constant 0 : i32
    %c0_i32_1 = arith.constant 0 : i32
    return %c0_i32, %c0_i32_0 : i32, i32
  }
  func.func @transform_4(%arg0: i32) -> (i32, i32) {
    %c0_i32 = arith.constant 0 : i32
    %c0_i32_0 = arith.constant 0 : i32
    %c0_i32_1 = arith.constant 0 : i32
    return %c0_i32, %c0_i32_0 : i32, i32
  }
  func.func @transform_5(%arg0: i32) -> (i32, i32) {
    %c0_i32 = arith.constant 0 : i32
    %c0_i32_0 = arith.constant 0 : i32
    return %arg0, %c0_i32 : i32, i32
  }
}

</mosaic_0001>

<bundles_post_ra>
// kernel: tpu_custom_call.1
= control target key start
LH: loop header
LB: loop body
LE: loop exit
PB: predicated region body
PF: predicated region fallthrough
CT: control target
= control target key end

     0   :  { %10 = vsyncpa [#allocation3], 0  ;;  %s1201_s0 = inlined_call_operand.hbm [shape: f32[16,784], index: 0, kind: input, shape index: {}]   ;;  %s1202_s1 = inlined_call_operand.hbm [shape: bf16[784,128], index: 1, kind: input, shape index: {}]   ;;  %s1203_s2 = inlined_call_operand.vmem [shape: f32[1,128], index: 2, kind: input, shape index: {}]   ;;  %s1204_s3 = inlined_call_operand.vmem [shape: bf16[128,16], index: 3, kind: input, shape index: {}]   ;;  %s1205_s4 = inlined_call_operand.vmem [shape: f32[1,16], index: 4, kind: input, shape index: {}]   ;;  %s1206_s5 = inlined_call_operand.hbm [shape: f32[16,16], index: 5, kind: output, shape index: {}]  }
   0x1   :  { %11 = vsyncpa [#allocation6], 0 }
   0x2   :  { %12 = vsyncpa [#allocation4], 0  ;;  %s1078_s18 = smov [#allocation2]   ;;  %s1006_s22 = scalar_lea.hbm %s1201_s0, 1792 }
   0x3   :  { %s18_s19 = sshll.u32 %s1078_s18, 4  ;;  %p1007_p0 = scmp.ne.s32.totalorder %s1201_s0, %s1006_s22  ;;  %s19_s19 = int_to_ptr.vmem [resolvable:$true] %s18_s19 }
   0x4   :  { %p1010_p1 = scmp.lt.u32.totalorder %s1006_s22, %s1201_s0 }
   0x6   :  { %p1012_p2 = pnand %p1010_p1, %p1007_p0 }
   0x8   :  { %1015 = shalt.err (!%p1012_p2)
}
   0x9   :  { %s1016_s27 = scalar_lea.vmem %s19_s19, 1792  ;;  %p1021_p4 = scmp.lt.s32.totalorder %s19_s19, %s19_s19 }
   0xa   :  { %p1017_p3 = scmp.ne.s32.totalorder %s19_s19, %s1016_s27  ;;  %p1022_p5 = scmp.lt.s32.totalorder %s1016_s27, %s1016_s27 }
   0xc   :  { %p1023_p6 = por %p1022_p5, %p1021_p4 }
   0xe   :  { %p1024_p7 = pnand %p1023_p6, %p1017_p3 }
  0x10   :  { %1027 = shalt.err (!%p1024_p7)
}
  0x11   :  { %s1079_s28 = smov 896   ;;  %s1080_s29 = smov 56  }
  0x12   :  { %24 = dma.hbm_to_vmem [thread:$0]  %s1201_s0, 1792, %s19_s19, [#allocation3], %s1079_s28, %s1079_s28, %s1080_s29  }
  0x13   :  { %s1081_s7 = smov [#allocation5]   ;;  %s1028_s11 = scalar_lea.hbm %s1202_s1, 6272 }
  0x14   :  { %s30_s8 = sshll.u32 %s1081_s7, 4  ;;  %p1029_p8 = scmp.ne.s32.totalorder %s1202_s1, %s1028_s11  ;;  %s31_s8 = int_to_ptr.vmem [resolvable:$true] %s30_s8 }
  0x15   :  { %p1032_p9 = scmp.lt.u32.totalorder %s1028_s11, %s1202_s1 }
  0x17   :  { %p1034_p10 = pnand %p1032_p9, %p1029_p8 }
  0x19   :  { %1037 = shalt.err (!%p1034_p10)
}
  0x1a   :  { %s1038_s16 = scalar_lea.vmem %s31_s8, 6272  ;;  %p1043_p12 = scmp.lt.s32.totalorder %s31_s8, %s31_s8 }
  0x1b   :  { %p1039_p11 = scmp.ne.s32.totalorder %s31_s8, %s1038_s16  ;;  %p1044_p13 = scmp.lt.s32.totalorder %s1038_s16, %s1038_s16 }
  0x1d   :  { %p1045_p0 = por %p1044_p13, %p1043_p12 }
  0x1f   :  { %p1046_p1 = pnand %p1045_p0, %p1039_p11 }
  0x21   :  { %1049 = shalt.err (!%p1046_p1)
}
  0x22   :  { %s1082_s0 = smov 64   ;;  %s1083_s17 = smov 4  }
  0x23   :  { %36 = dma.hbm_to_vmem [thread:$0]  %s1202_s1, 6272, %s31_s8, [#allocation6], %s1082_s0, %s1082_s0, %s1083_s17  }
  0x24   :  { %1072 = dma.done.wait [#allocation3], 1792  }
  0x25   :  { %1073 = vsyncadd [#allocation3], 4294965504 }
  0x26   :  { %1074 = dma.done.wait [#allocation6], 6272  }
  0x27   :  { %1075 = vsyncadd [#allocation6], 4294961024  ;;  %v949_v0 = vld [vmem:[#allocation5 + $0x40] sm:$0xff]   ;;  %v953_v4 = vld [vmem:[#allocation5 + $0x48] sm:$0xff]   ;;  %v1084_v43 = vmov 0.0   ;;  %vm1085_vm0 = vmmov 0  }
  0x28   :  { %v950_v1 = vld [vmem:[#allocation5] sm:$0xff]   ;;  %835 = vmatprep.subr.bf16.mxu0 %v949_v0  ;;  %v954_v5 = vld [vmem:[#allocation5 + $0x8] sm:$0xff]   ;;  %v957_v8 = vld [vmem:[#allocation5 + $0x50] sm:$0xff]   ;;  %vm470_vm1 = vcmask 130048   ;;  %s1086_s12 = smov [#allocation7]  }
  0x29   :  { %v951_v2 = vld [vmem:[#allocation5 + $0xc0] sm:$0xff]   ;;  %836 = vmatpush3.bf16.msra.mxu0 %v950_v1  ;;  %v955_v6 = vld [vmem:[#allocation5 + $0xc8] sm:$0xff]   ;;  %v958_v9 = vld [vmem:[#allocation5 + $0x10] sm:$0xff]   ;;  %s762_s13 = sshll.u32 %s1086_s12, 4  ;;  %s763_s13 = int_to_ptr.vmem [resolvable:$true] %s762_s13 }
  0x2a   :  { %v952_v3 = vld [vmem:[#allocation5 + $0x80] sm:$0xff]   ;;  %857 = vmatprep.subr.bf16.mxu1 %v951_v2  ;;  %837 = vmatprep.subr.bf16.mxu0 %v953_v4  ;;  %v956_v7 = vld [vmem:[#allocation5 + $0x88] sm:$0xff]   ;;  %v959_v10 = vld [vmem:[#allocation5 + $0xd0] sm:$0xff]   ;;  %s1050_s14 = scalar_lea.vmem %s763_s13, 256  ;;  %p1055_p3 = scmp.lt.s32.totalorder %s763_s13, %s763_s13 }
  0x2b   :  { %858 = vmatpush3.bf16.msra.mxu1 %v952_v3  ;;  %v960_v11 = vld [vmem:[#allocation5 + $0x90] sm:$0xff]   ;;  %v961_v12 = vld [vmem:[#allocation5 + $0x58] sm:$0xff]   ;;  %v965_v16 = vld [vmem:[#allocation5 + $0x60] sm:$0xff]   ;;  %p1051_p2 = scmp.ne.s32.totalorder %s763_s13, %s1050_s14  ;;  %p1056_p4 = scmp.lt.s32.totalorder %s1050_s14, %s1050_s14 }
  0x2c   :  { %859 = vmatprep.subr.bf16.mxu1 %v955_v6  ;;  %v962_v13 = vld [vmem:[#allocation5 + $0x18] sm:$0xff]   ;;  %v966_v17 = vld [vmem:[#allocation5 + $0x20] sm:$0xff]   ;;  %v969_v20 = vld [vmem:[#allocation5 + $0x68] sm:$0xff]  }
  0x2d   :  { %838 = vmatpush3.bf16.msra.mxu0 %v954_v5  ;;  %v963_v14 = vld [vmem:[#allocation5 + $0xd8] sm:$0xff]   ;;  %v967_v18 = vld [vmem:[#allocation5 + $0xe0] sm:$0xff]   ;;  %v970_v21 = vld [vmem:[#allocation5 + $0x28] sm:$0xff]   ;;  %p1057_p5 = por %p1056_p4, %p1055_p3 }
  0x2e   :  { %839 = vmatprep.subr.bf16.mxu0 %v957_v8  ;;  %v964_v15 = vld [vmem:[#allocation5 + $0x98] sm:$0xff]   ;;  %v968_v19 = vld [vmem:[#allocation5 + $0xa0] sm:$0xff]   ;;  %v971_v22 = vld [vmem:[#allocation5 + $0xe8] sm:$0xff]  }
  0x2f   :  { %860 = vmatpush3.bf16.msra.mxu1 %v956_v7  ;;  %v972_v23 = vld [vmem:[#allocation5 + $0xa8] sm:$0xff]   ;;  %v973_v24 = vld [vmem:[#allocation5 + $0x70] sm:$0xff]   ;;  %v977_v28 = vld [vmem:[#allocation5 + $0x78] sm:$0xff]   ;;  %p1058_p6 = pnand %p1057_p5, %p1051_p2 }
  0x30   :  { %861 = vmatprep.subr.bf16.mxu1 %v959_v10  ;;  %v974_v25 = vld [vmem:[#allocation5 + $0x30] sm:$0xff]   ;;  %v978_v29 = vld [vmem:[#allocation5 + $0x38] sm:$0xff]   ;;  %v57_v36 = vld [vmem:[#allocation2 + $0x38] sm:$0xff] }
  0x31   :  { %840 = vmatpush3.bf16.msra.mxu0 %v958_v9  ;;  %v975_v26 = vld [vmem:[#allocation5 + $0xf0] sm:$0xff]   ;;  %v979_v30 = vld [vmem:[#allocation5 + $0xf8] sm:$0xff]   ;;  %v981_v38 = vld [vmem:[#allocation5 + $0x140] sm:$0xff]  }
  0x32   :  { %841 = vmatprep.subr.bf16.mxu0 %v961_v12  ;;  %v976_v27 = vld [vmem:[#allocation5 + $0xb0] sm:$0xff]   ;;  %v51_v31 = vld [vmem:[#allocation2 + $0x8] sm:$0xff]  ;;  %v53_v39 = vld [vmem:[#allocation2 + $0x18] sm:$0xff] }
  0x33   :  { %862 = vmatpush3.bf16.msra.mxu1 %v960_v11  ;;  %v58_v32 = vld [vmem:[#allocation2 + $0x40] sm:$0xff]  ;;  %v980_v34 = vld [vmem:[#allocation5 + $0xb8] sm:$0xff]   ;;  %v60_v40 = vld [vmem:[#allocation2 + $0x50] sm:$0xff] }
  0x34   :  { %863 = vmatprep.subr.bf16.mxu1 %v963_v14  ;;  %v65_v33 = vpack.c.bf16 %v58_v32, %v51_v31  ;;  %v50_v35 = vld [vmem:[#allocation2] sm:$0xff]  ;;  %v67_v41 = vpack.c.bf16 %v60_v40, %v53_v39  ;;  %v982_v42 = vld [vmem:[#allocation5 + $0x100] sm:$0xff]   ;;  %v59_v45 = vld [vmem:[#allocation2 + $0x48] sm:$0xff] }
  0x35   :  { %842 = vmatpush3.bf16.msra.mxu0 %v962_v13  ;;  %v64_v37 = vpack.c.bf16 %v57_v36, %v50_v35  ;;  %v52_v44 = vld [vmem:[#allocation2 + $0x10] sm:$0xff]  ;;  %v983_v47 = vld [vmem:[#allocation5 + $0x148] sm:$0xff]   ;;  %v985_v49 = vld [vmem:[#allocation5 + $0x150] sm:$0xff]  }
  0x36   :  { %843 = vmatprep.subr.bf16.mxu0 %v965_v16  ;;  %506 = vmatprep.mubr.bf16.mxu0 %v65_v33  ;;  %v66_v46 = vpack.c.bf16 %v59_v45, %v52_v44  ;;  %v984_v48 = vld [vmem:[#allocation5 + $0x108] sm:$0xff]   ;;  %v986_v50 = vld [vmem:[#allocation5 + $0x110] sm:$0xff]   ;;  %v987_v51 = vld [vmem:[#allocation5 + $0x158] sm:$0xff]  }
  0x37   :  { %864 = vmatpush3.bf16.msra.mxu1 %v964_v15  ;;  %547 = vmatprep.mubr.bf16.mxu1 %v67_v41  ;;  %v988_v52 = vld [vmem:[#allocation5 + $0x118] sm:$0xff]   ;;  %v989_v53 = vld [vmem:[#allocation5 + $0x160] sm:$0xff]   ;;  %v991_v55 = vld [vmem:[#allocation5 + $0x168] sm:$0xff]  }
  0x38   :  { %865 = vmatprep.subr.bf16.mxu1 %v967_v18  ;;  %v990_v54 = vld [vmem:[#allocation5 + $0x120] sm:$0xff]   ;;  %v55_v57 = vld [vmem:[#allocation2 + $0x28] sm:$0xff]  ;;  %v992_v58 = vld [vmem:[#allocation5 + $0x128] sm:$0xff]  }
  0x39   :  { %844 = vmatpush3.bf16.msra.mxu0 %v966_v17  ;;  %v997_v56 = vld [vmem:[#allocation5 + $0x180] sm:$0xff]   ;;  %v993_v59 = vld [vmem:[#allocation5 + $0x170] sm:$0xff]   ;;  %v63_v63 = vld [vmem:[#allocation2 + $0x68] sm:$0xff] }
  0x3a   :  { %845 = vmatprep.subr.bf16.mxu0 %v969_v20  ;;  %v62_v60 = vld [vmem:[#allocation2 + $0x60] sm:$0xff]  ;;  %v56_v62 = vld [vmem:[#allocation2 + $0x30] sm:$0xff]  ;;  %v995_v2 = vld [vmem:[#allocation5 + $0x178] sm:$0xff]  }
  0x3b   :  { %866 = vmatpush3.bf16.msra.mxu1 %v968_v19  ;;  %v69_v61 = vpack.c.bf16 %v62_v60, %v55_v57  ;;  %v70_v0 = vpack.c.bf16 %v63_v63, %v56_v62  ;;  %v994_v1 = vld [vmem:[#allocation5 + $0x130] sm:$0xff]   ;;  %v996_v3 = vld [vmem:[#allocation5 + $0x138] sm:$0xff]   ;;  %v61_v5 = vld [vmem:[#allocation2 + $0x58] sm:$0xff] }
  0x3c   :  { %867 = vmatprep.subr.bf16.mxu1 %v971_v22  ;;  %v54_v4 = vld [vmem:[#allocation2 + $0x20] sm:$0xff]  ;;  %v999_v8 = vld [vmem:[%s1204_s3 + $0x8] sm:$0xff]   ;;  %v1000_v9 = vld [vmem:[%s1204_s3 + $0x10] sm:$0xff]  }
  0x3d   :  { %846 = vmatpush3.bf16.msra.mxu0 %v970_v21  ;;  %v68_v6 = vpack.c.bf16 %v61_v5, %v54_v4  ;;  %v998_v7 = vld [vmem:[%s1204_s3] sm:$0xff]   ;;  %v1001_v10 = vld [vmem:[%s1204_s3 + $0x18] sm:$0xff]   ;;  %v1003_v12 = vld [vmem:[%s1204_s3 + $0x28] sm:$0xff]  }
  0x3e   :  { %847 = vmatprep.subr.bf16.mxu0 %v973_v24  ;;  %v1002_v11 = vld [vmem:[%s1204_s3 + $0x20] sm:$0xff]   ;;  %v1004_v13 = vld [vmem:[%s1204_s3 + $0x30] sm:$0xff]   ;;  %v1005_v14 = vld [vmem:[%s1204_s3 + $0x38] sm:$0xff]  }
  0x3f   :  { %868 = vmatpush3.bf16.msra.mxu1 %v972_v23  ;;  %v775_v16 = vld [vmem:[%s1203_s2] ss:$0 sm:$0xff] }
  0x40   :  { %869 = vmatprep.subr.bf16.mxu1 %v975_v26 }
  0x41   :  { %848 = vmatpush3.bf16.msra.mxu0 %v974_v25 }
  0x42   :  { %849 = vmatprep.subr.bf16.mxu0 %v977_v28 }
  0x43   :  { %870 = vmatpush3.bf16.msra.mxu1 %v976_v27 }
  0x44   :  { %871 = vmatprep.subr.bf16.mxu1 %v979_v30 }
  0x45   :  { %850 = vmatpush3.bf16.msra.mxu0 %v978_v29 }
  0x46   :  { %879 = vmatprep.subr.bf16.mxu0 %v981_v38 }
  0x47   :  { %872 = vmatpush3.bf16.msra.mxu1 %v980_v34 }
  0x48   :  { %912 = vmatprep.subr.bf16.mxu1 %v1084_v43  ;;  %507 = vmatmul.mubr.bf16.vlgmr.msra.gmra.mrb[0].mxu0 %v64_v37 }
  0x49   :  { %880 = vmatpush3.bf16.msra.mxu0 %v982_v42  ;;  %588 = vmatprep.mubr.bf16.mxu0 %v69_v61 }
  0x4a   :  { %548 = vmatmul.mubr.bf16.vlgmr.msra.gmra.mrb[0].mxu1 %v66_v46  ;;  %881 = vmatprep.subr.bf16.mxu0 %v983_v47 }
  0x4b   :  { %914 = vmatprep.mubr.msk.bf16.mxu1 %vm1085_vm0, %v1084_v43  ;;  %913 = vmatpush3.bf16.msra.mxu1 %v997_v56 }
  0x4c   :  { %918 = vmatprep.subr.bf16.mxu1 %v1084_v43 }
  0x4d   :  { %882 = vmatpush3.bf16.msra.mxu0 %v984_v48 }
  0x4e   :  { %883 = vmatprep.subr.bf16.mxu0 %v985_v49 }
  0x51   :  { %884 = vmatpush3.bf16.msra.mxu0 %v986_v50 }
  0x52   :  { %885 = vmatprep.subr.bf16.mxu0 %v987_v51  ;;  %915 = vmatmul.mubr.msk.bf16.vlgmr.msra.gmra.mrb[4].mxu1 %vm470_vm1, %v70_v0  ;;  %v826_v51 = vld [vmem:[%s1205_s4] ss:$0 sm:$0xff] }
  0x53   :  { %934 = vmatprep.mubr.msk.bf16.mxu1 %vm1085_vm0, %v1084_v43  ;;  %919 = vmatpush3.bf16.msra.mxu1 %v998_v7 }
  0x54   :  { %920 = vmatprep.subr.bf16.mxu1 %v1084_v43 }
  0x55   :  { %886 = vmatpush3.bf16.msra.mxu0 %v988_v52 }
  0x56   :  { %887 = vmatprep.subr.bf16.mxu0 %v989_v53 }
  0x57   :  { %921 = vmatpush3.bf16.msra.mxu1 %v999_v8 }
  0x58   :  { %922 = vmatprep.subr.bf16.mxu1 %v1084_v43 }
  0x59   :  { %888 = vmatpush3.bf16.msra.mxu0 %v990_v54 }
  0x5a   :  { %889 = vmatprep.subr.bf16.mxu0 %v991_v55 }
  0x5b   :  { %923 = vmatpush3.bf16.msra.mxu1 %v1000_v9 }
  0x5c   :  { %924 = vmatprep.subr.bf16.mxu1 %v1084_v43 }
  0x5d   :  { %890 = vmatpush3.bf16.msra.mxu0 %v992_v58 }
  0x5e   :  { %891 = vmatprep.subr.bf16.mxu0 %v993_v59 }
  0x5f   :  { %925 = vmatpush3.bf16.msra.mxu1 %v1001_v10 }
  0x60   :  { %926 = vmatprep.subr.bf16.mxu1 %v1084_v43 }
  0x61   :  { %892 = vmatpush3.bf16.msra.mxu0 %v994_v1 }
  0x62   :  { %893 = vmatprep.subr.bf16.mxu0 %v995_v2 }
  0x63   :  { %927 = vmatpush3.bf16.msra.mxu1 %v1002_v11 }
  0x64   :  { %928 = vmatprep.subr.bf16.mxu1 %v1084_v43 }
  0x65   :  { %894 = vmatpush3.bf16.msra.mxu0 %v996_v3 }
  0x67   :  { %929 = vmatpush3.bf16.msra.mxu1 %v1003_v12 }
  0x68   :  { %589 = vmatmul.mubr.bf16.vlgmr.msra.gmra.mrb[4].mxu0 %v68_v6  ;;  %930 = vmatprep.subr.bf16.mxu1 %v1084_v43 }
  0x6b   :  { %931 = vmatpush3.bf16.msra.mxu1 %v1004_v13 }
  0x6c   :  { %932 = vmatprep.subr.bf16.mxu1 %v1084_v43 }
  0x6f   :  { %933 = vmatpush3.bf16.msra.mxu1 %v1005_v14 }
 0x11b   :  { %v851_v15 = vpop.f32.mrb[0].mxu0 }
 0x11c   :  { %v852_v17 = vpop.f32.mrb[1].mxu0 }
 0x11d   :  { %v853_v18 = vadd.f32 %v852_v17, %v851_v15  ;;  %v854_v19 = vpop.f32.mrb[2].mxu0  ;;  %v873_v20 = vpop.f32.mrb[0].mxu1 }
 0x11e   :  { %v855_v21 = vpop.f32.mrb[3].mxu0  ;;  %v874_v24 = vpop.f32.mrb[1].mxu1 }
 0x11f   :  { %v509_v22 = vadd.f32 %v853_v18, %v775_v16  ;;  %v856_v23 = vadd.f32 %v855_v21, %v854_v19  ;;  %v875_v25 = vadd.f32 %v874_v24, %v873_v20  ;;  %v876_v26 = vpop.f32.mrb[2].mxu1 }
 0x120   :  { %v877_v28 = vpop.f32.mrb[3].mxu1 }
 0x121   :  { %v512_v27 = vadd.f32 %v856_v23, %v775_v16  ;;  %v550_v29 = vadd.f32 %v875_v25, %v509_v22  ;;  %v878_v30 = vadd.f32 %v877_v28, %v876_v26 }
 0x123   :  { %v553_v31 = vadd.f32 %v878_v30, %v512_v27 }
 0x125   :  { %v631_v32 = vpop.f32.mrb[4].mxu1 }
 0x126   :  { %v916_v33 = vpop.f32.mrb[5].mxu1 }
 0x127   :  { %v634_v34 = vpop.f32.mrb[6].mxu1 }
 0x128   :  { %v917_v35 = vpop.f32.mrb[7].mxu1 }
 0x13b   :  { %v895_v36 = vpop.f32.mrb[4].mxu0 }
 0x13c   :  { %v896_v37 = vpop.f32.mrb[5].mxu0 }
 0x13d   :  { %v897_v38 = vadd.f32 %v896_v37, %v895_v36  ;;  %v898_v39 = vpop.f32.mrb[6].mxu0 }
 0x13e   :  { %v899_v40 = vpop.f32.mrb[7].mxu0 }
 0x13f   :  { %v591_v41 = vadd.f32 %v897_v38, %v550_v29  ;;  %v900_v42 = vadd.f32 %v899_v40, %v898_v39 }
 0x141   :  { %v632_v43 = vadd.f32 %v631_v32, %v591_v41  ;;  %v594_v44 = vadd.f32 %v900_v42, %v553_v31 }
 0x143   :  { %v638_v45 = vmul.f32 0.01, %v632_v43  ;;  %v635_v46 = vadd.f32 %v634_v34, %v594_v44 }
 0x145   :  { %v639_v47 = vmul.f32 0.01, %v635_v46  ;;  %v640_v48 = vmax.f32 %v632_v43, %v638_v45 }
 0x147   :  { %v641_v49 = vmax.f32 %v635_v46, %v639_v47 }
 0x149   :  { %v642_v50 = vpack.c.bf16 %v641_v49, %v640_v48 }
 0x14b   :  { %935 = vmatmul.mubr.bf16.vlgmr.msra.gmra.mrb[8].mxu1 %v642_v50 }
 0x21e   :  { %v748_v52 = vpop.f32.mrb[8].mxu1 }
 0x21f   :  { %v749_v53 = vadd.f32 %v826_v51, %v748_v52  ;;  %v936_v54 = vpop.f32.mrb[9].mxu1 }
 0x220   :  { %v751_v55 = vpop.f32.mrb[10].mxu1 }
 0x221   :  { %755 = vst.msk [vmem:[#allocation7] sm:$0xff] %vm470_vm1, %v749_v53  ;;  %v752_v56 = vadd.f32 %v826_v51, %v751_v55  ;;  %v937_v57 = vpop.f32.mrb[11].mxu1 }
 0x223   :  { %756 = vst.msk [vmem:[#allocation7 + $0x8] sm:$0xff] %vm470_vm1, %v752_v56 }
 0x224   :  { %1061 = shalt.err (!%p1058_p6)
}
 0x225   :  { %s1062_s16 = scalar_lea.hbm %s1206_s5, 256 }
 0x226   :  { %p1063_p7 = scmp.ne.s32.totalorder %s1206_s5, %s1062_s16  ;;  %p1066_p8 = scmp.lt.u32.totalorder %s1062_s16, %s1206_s5 }
 0x228   :  { %p1068_p9 = pnand %p1066_p8, %p1063_p7 }
 0x22a   :  { %1071 = shalt.err (!%p1068_p9)
}
 0x22b   :  { %s1087_s1 = smov 128   ;;  %s1088_s20 = smov 8  }
 0x22c   :  { %768 = dma.vmem_to_hbm [thread:$0]  %s763_s13, 256, %s1206_s5, [#allocation4], %s1087_s1, %s1087_s1, %s1088_s20  }
 0x22d   :  { %1076 = dma.done.wait [#allocation4], 256  }
 0x22e   :  { %1077 = vsyncadd [#allocation4], 4294967040 }
 0x22f   :  { %772 = vsyncpa [#allocation3], 1 }
 0x230   :  { %773 = vsyncpa [#allocation6], 1 }
 0x231   :  { %774 = vsyncpa [#allocation4], 1 }

</bundles_post_ra>
